<compile_context>
chip_gen: v6e
topology: v6e:2x2x1
jax: 0.10.0
libtpu: 0.0.40
codegen_flags: <defaults>
</compile_context>

<pallas_src>
import functools

import jax
import jax.numpy as jnp
from jax.experimental import pallas as pl
from jax.experimental.pallas import tpu as pltpu


def _round_up(n, m):
    return ((n + m - 1) // m) * m


def mlp_d_kernel(x_ref, w1_ref, b1_ref, w2_ref, b2_ref, w3_ref, b3_ref, o_ref,
                 *, slope):
    """Fused 3-layer MLP for one batch tile.

    x_ref:  (tb, x_size) f32   -- streamed; cast to bf16 here (not in the wrapper)
    w1_ref: (x_size, h1) bf16, b1_ref: (1, h1) f32
    w2_ref: (h1, h2)     bf16, b2_ref: (1, h2) f32
    w3_ref: (1, h2)      bf16, b3_ref: (1,)    f32 scalar in SMEM
    o_ref:  (1, 1, tb)   f32   -- lane-dense output row
    """
    x = x_ref[...].astype(jnp.bfloat16)                       # in-kernel cast

    # Layer 1: MXU matmul (bf16 in, f32 acc) + bias + LeakyReLU (VPU, f32).
    h = jnp.dot(x, w1_ref[...], preferred_element_type=jnp.float32)
    h = h + b1_ref[...]                                       # (tb, h1) f32
    h = jnp.maximum(h, slope * h)                             # valid for 0<=slope<=1

    # Layer 2: MXU matmul (bf16 in, f32 acc) + bias + LeakyReLU.
    h = jnp.dot(h.astype(jnp.bfloat16), w2_ref[...],
                preferred_element_type=jnp.float32)
    h = h + b2_ref[...]                                       # (tb, h2) f32
    h = jnp.maximum(h, slope * h)

    # Layer 3 (output width 1): contract w3 (1, h2) with h (tb, h2) over h2 so the
    # result is already a lane-dense (1, tb) row (no lane-sparse column store).
    out_row = jax.lax.dot_general(
        w3_ref[...], h.astype(jnp.bfloat16),
        dimension_numbers=(((1,), (1,)), ((), ())),
        preferred_element_type=jnp.float32)                   # (1, tb) f32
    out_row = out_row + b3_ref[0]                             # scalar bias (SMEM)

    o_ref[0] = out_row.astype(o_ref.dtype)


def mlp_d_forward(x, params, *, slope=0.2, tb=None):
    """x: (B, x_size) float32. Returns (B, 1) float32."""
    assert 0.0 <= slope <= 1.0, "maximum(h, slope*h) LeakyReLU needs 0 <= slope <= 1"
    w1, b1, w2, b2, w3, b3 = params
    B, x_size = x.shape
    h1 = w1.shape[1]
    h2 = w2.shape[1]

    if tb is None:
        # >=2 fat grid steps when possible (multi-TC sharding) with a lane-aligned
        # (multiple-of-128) tile for the lane-dense output row; cap keeps the
        # per-step VMEM footprint tiny.  Sweep upward on real workloads.
        tb = min(4096, _round_up(max(B // 2, 1), 128))
    assert tb % 8 == 0, "batch tile must be sublane-aligned (multiple of 8)"

    nblk = pl.cdiv(B, tb)
    Bp = nblk * tb

    xp = x  # streamed as f32; cast to bf16 inside the kernel (saves an HBM pass)
    if Bp != B:
        xp = jnp.pad(xp, ((0, Bp - B), (0, 0)))  # ragged path: extra copy, minor

    w1b = w1.astype(jnp.bfloat16)
    w2b = w2.astype(jnp.bfloat16)
    w3b = w3.reshape(1, h2).astype(jnp.bfloat16)   # layer-3 weights as a bf16 row
    b1f = b1.reshape(1, h1).astype(jnp.float32)
    b2f = b2.reshape(1, h2).astype(jnp.float32)
    b3s = b3.reshape(1).astype(jnp.float32)        # scalar bias -> SMEM

    kernel = functools.partial(mlp_d_kernel, slope=slope)

    out = pl.pallas_call(
        kernel,
        out_shape=jax.ShapeDtypeStruct((nblk, 1, tb), jnp.float32),
        grid_spec=pltpu.PrefetchScalarGridSpec(
            num_scalar_prefetch=0,
            grid=(nblk,),
            in_specs=[
                pl.BlockSpec((tb, x_size), lambda i: (i, 0)),   # x tile (streamed f32)
                pl.BlockSpec((x_size, h1), lambda i: (0, 0)),   # W1 (resident)
                pl.BlockSpec((1, h1),      lambda i: (0, 0)),   # b1
                pl.BlockSpec((h1, h2),     lambda i: (0, 0)),   # W2
                pl.BlockSpec((1, h2),      lambda i: (0, 0)),   # b2
                pl.BlockSpec((1, h2),      lambda i: (0, 0)),   # W3 row
                pl.BlockSpec(memory_space=pltpu.MemorySpace.SMEM),  # b3 scalar
            ],
            out_specs=pl.BlockSpec((1, 1, tb), lambda i: (i, 0, 0)),  # lane-dense row
        ),
        compiler_params=pltpu.CompilerParams(
            # "parallel" is the portable choice across v5e/v6e/v7x; on v7x one can
            # switch this axis to pltpu.CORE_PARALLEL when tuning for 2 TCs.
            dimension_semantics=("parallel",),
            vmem_limit_bytes=32 * 1024 * 1024),
    )(xp, w1b, b1f, w2b, b2f, w3b, b3s)

    return out.reshape(Bp, 1)[:B]


def init_mlp_d_params(key, x_size, h1_size, h2_size):
    """PyTorch-style uniform init: U(-1/sqrt(fan_in), 1/sqrt(fan_in)).
    Weights stored as (in_features, out_features)."""
    ks = jax.random.split(key, 6)

    def lin(kw, kb, fan_in, fan_out):
        bound = 1.0 / jnp.sqrt(fan_in)
        w = jax.random.uniform(kw, (fan_in, fan_out), jnp.float32, -bound, bound)
        b = jax.random.uniform(kb, (1, fan_out), jnp.float32, -bound, bound)
        return w, b

    w1, b1 = lin(ks[0], ks[1], x_size, h1_size)
    w2, b2 = lin(ks[2], ks[3], h1_size, h2_size)
    w3, b3 = lin(ks[4], ks[5], h2_size, 1)
    return (w1, b1, w2, b2, w3, b3)


def mlp_d_reference(x, params, slope=0.2):
    """Pure-JAX reference mirroring the kernel's bf16-input / f32-accumulate math."""
    w1, b1, w2, b2, w3, b3 = params
    h = jnp.dot(x.astype(jnp.bfloat16), w1.astype(jnp.bfloat16),
                preferred_element_type=jnp.float32) + b1
    h = jnp.maximum(h, slope * h)
    h = jnp.dot(h.astype(jnp.bfloat16), w2.astype(jnp.bfloat16),
                preferred_element_type=jnp.float32) + b2
    h = jnp.maximum(h, slope * h)
    out = jnp.dot(h.astype(jnp.bfloat16), w3.astype(jnp.bfloat16),
                  preferred_element_type=jnp.float32) + b3.reshape(1, 1)
    return out


if __name__ == "__main__":
    # Config: x_size=64, D_h1_size=128, D_h2_size=64, LeakyReLU_slope=0.2
    X_SIZE, H1, H2 = 64, 128, 64
    SLOPE = 0.2

    key = jax.random.PRNGKey(0)
    k_x, k_p, k_x2 = jax.random.split(key, 3)
    params = init_mlp_d_params(k_p, X_SIZE, H1, H2)

    # Main check: B=512 -> default tb=256, 2 parallel grid steps.
    B = 512
    x = jax.random.normal(k_x, (B, X_SIZE), jnp.float32)
    out = jax.block_until_ready(mlp_d_forward(x, params, slope=SLOPE))
    ref = mlp_d_reference(x, params, slope=SLOPE)
    assert out.shape == (B, 1)
    assert jnp.allclose(out, ref, atol=2e-3, rtol=2e-3), "mismatch vs reference"

    # Ragged-batch check (B not a multiple of the tile -> exercises padding path).
    B2 = 200
    x2 = jax.random.normal(k_x2, (B2, X_SIZE), jnp.float32)
    out2 = jax.block_until_ready(mlp_d_forward(x2, params, slope=SLOPE))
    ref2 = mlp_d_reference(x2, params, slope=SLOPE)
    assert out2.shape == (B2, 1)
    assert jnp.allclose(out2, ref2, atol=2e-3, rtol=2e-3), "ragged mismatch vs reference"

    print("KERNEL_OK")
</pallas_src>

<mosaic_0001>
module attributes {stable_mosaic.version = 11 : i64} {
  func.func @mlp_d_kernel(%arg0: i32, %arg1: memref<256x64xf32, #tpu.memory_space<vmem>>, %arg2: memref<64x128xbf16, #tpu.memory_space<vmem>>, %arg3: memref<1x128xf32, #tpu.memory_space<vmem>>, %arg4: memref<128x64xbf16, #tpu.memory_space<vmem>>, %arg5: memref<1x64xf32, #tpu.memory_space<vmem>>, %arg6: memref<1x64xbf16, #tpu.memory_space<vmem>>, %arg7: memref<1xf32, #tpu.memory_space<smem>>, %arg8: memref<1x1x256xf32, #tpu.memory_space<vmem>>) attributes {dimension_semantics = [#tpu.dimension_semantics<parallel>], iteration_bounds = array<i64: 2>, scalar_prefetch = 0 : i64, scratch_operands = 0 : i64, tpu.core_type = #tpu.core_type<tc>, window_params = [{transform_indices = @transform_0, window_bounds = array<i64: 256, 64>}, {pipeline_mode = #tpu.pipeline_mode<synchronous>, transform_indices = @transform_1, window_bounds = array<i64: 64, 128>}, {pipeline_mode = #tpu.pipeline_mode<synchronous>, transform_indices = @transform_2, window_bounds = array<i64: 1, 128>}, {pipeline_mode = #tpu.pipeline_mode<synchronous>, transform_indices = @transform_3, window_bounds = array<i64: 128, 64>}, {pipeline_mode = #tpu.pipeline_mode<synchronous>, transform_indices = @transform_4, window_bounds = array<i64: 1, 64>}, {pipeline_mode = #tpu.pipeline_mode<synchronous>, transform_indices = @transform_5, window_bounds = array<i64: 1, 64>}, {transform_indices = @transform_6, window_bounds = array<i64: 1>}, {transform_indices = @transform_7, window_bounds = array<i64: 1, 1, 256>}]} {
    %c0 = arith.constant 0 : index
    %c0_0 = arith.constant 0 : index
    %0 = vector.load %arg1[%c0, %c0_0] : memref<256x64xf32, #tpu.memory_space<vmem>>, vector<256x64xf32>
    %1 = arith.truncf %0 : vector<256x64xf32> to vector<256x64xbf16>
    %c0_1 = arith.constant 0 : index
    %c0_2 = arith.constant 0 : index
    %2 = vector.load %arg2[%c0_1, %c0_2] : memref<64x128xbf16, #tpu.memory_space<vmem>>, vector<64x128xbf16>
    %cst = arith.constant dense<0.000000e+00> : vector<256x128xf32>
    %3 = tpu.matmul %1, %2, %cst {dimension_numbers = #tpu.dot_dimension_numbers<[1], [0], [0], [1], [0, 0, 1, 1], [], []>} : vector<256x64xbf16>, vector<64x128xbf16>, vector<256x128xf32> -> vector<256x128xf32>
    %c0_3 = arith.constant 0 : index
    %c0_4 = arith.constant 0 : index
    %4 = vector.load %arg3[%c0_3, %c0_4] : memref<1x128xf32, #tpu.memory_space<vmem>>, vector<1x128xf32>
    %5 = vector.broadcast %4 : vector<1x128xf32> to vector<256x128xf32>
    %6 = arith.addf %3, %5 : vector<256x128xf32>
    %cst_5 = arith.constant 2.000000e-01 : f32
    %7 = vector.broadcast %cst_5 : f32 to vector<256x128xf32>
    %8 = arith.mulf %7, %6 : vector<256x128xf32>
    %9 = arith.maximumf %6, %8 : vector<256x128xf32>
    %10 = arith.truncf %9 : vector<256x128xf32> to vector<256x128xbf16>
    %c0_6 = arith.constant 0 : index
    %c0_7 = arith.constant 0 : index
    %11 = vector.load %arg4[%c0_6, %c0_7] : memref<128x64xbf16, #tpu.memory_space<vmem>>, vector<128x64xbf16>
    %cst_8 = arith.constant dense<0.000000e+00> : vector<256x64xf32>
    %12 = tpu.matmul %10, %11, %cst_8 {dimension_numbers = #tpu.dot_dimension_numbers<[1], [0], [0], [1], [0, 0, 1, 1], [], []>} : vector<256x128xbf16>, vector<128x64xbf16>, vector<256x64xf32> -> vector<256x64xf32>
    %c0_9 = arith.constant 0 : index
    %c0_10 = arith.constant 0 : index
    %13 = vector.load %arg5[%c0_9, %c0_10] : memref<1x64xf32, #tpu.memory_space<vmem>>, vector<1x64xf32>
    %14 = vector.broadcast %13 : vector<1x64xf32> to vector<256x64xf32>
    %15 = arith.addf %12, %14 : vector<256x64xf32>
    %cst_11 = arith.constant 2.000000e-01 : f32
    %16 = vector.broadcast %cst_11 : f32 to vector<256x64xf32>
    %17 = arith.mulf %16, %15 : vector<256x64xf32>
    %18 = arith.maximumf %15, %17 : vector<256x64xf32>
    %c0_12 = arith.constant 0 : index
    %c0_13 = arith.constant 0 : index
    %19 = vector.load %arg6[%c0_12, %c0_13] : memref<1x64xbf16, #tpu.memory_space<vmem>>, vector<1x64xbf16>
    %20 = arith.truncf %18 : vector<256x64xf32> to vector<256x64xbf16>
    %cst_14 = arith.constant dense<0.000000e+00> : vector<1x256xf32>
    %21 = tpu.matmul %19, %20, %cst_14 {dimension_numbers = #tpu.dot_dimension_numbers<[1], [1], [0], [0], [0, 0, 1, 0], [], []>} : vector<1x64xbf16>, vector<256x64xbf16>, vector<1x256xf32> -> vector<1x256xf32>
    %c0_15 = arith.constant 0 : index
    %22 = memref.load %arg7[%c0_15] : memref<1xf32, #tpu.memory_space<smem>>
    %23 = vector.broadcast %22 : f32 to vector<1x256xf32>
    %24 = arith.addf %21, %23 : vector<1x256xf32>
    %c0_16 = arith.constant 0 : index
    %c0_17 = arith.constant 0 : index
    %c0_18 = arith.constant 0 : index
    %25 = vector.load %arg8[%c0_16, %c0_17, %c0_18] : memref<1x1x256xf32, #tpu.memory_space<vmem>>, vector<1x1x256xf32>
    %26 = vector.shape_cast %25 : vector<1x1x256xf32> to vector<1x256xf32>
    %27 = vector.shape_cast %24 : vector<1x256xf32> to vector<1x1x256xf32>
    tpu.vector_store %arg8[%c0_16, %c0_17, %c0_18], %27 {strides = array<i32>} : memref<1x1x256xf32, #tpu.memory_space<vmem>>, vector<1x1x256xf32>,
    return
  }
  func.func @transform_0(%arg0: i32) -> (i32, i32) {
    %c0_i32 = arith.constant 0 : i32
    %c0_i32_0 = arith.constant 0 : i32
    return %arg0, %c0_i32 : i32, i32
  }
  func.func @transform_1(%arg0: i32) -> (i32, i32) {
    %c0_i32 = arith.constant 0 : i32
    %c0_i32_0 = arith.constant 0 : i32
    %c0_i32_1 = arith.constant 0 : i32
    return %c0_i32, %c0_i32_0 : i32, i32
  }
  func.func @transform_2(%arg0: i32) -> (i32, i32) {
    %c0_i32 = arith.constant 0 : i32
    %c0_i32_0 = arith.constant 0 : i32
    %c0_i32_1 = arith.constant 0 : i32
    return %c0_i32, %c0_i32_0 : i32, i32
  }
  func.func @transform_3(%arg0: i32) -> (i32, i32) {
    %c0_i32 = arith.constant 0 : i32
    %c0_i32_0 = arith.constant 0 : i32
    %c0_i32_1 = arith.constant 0 : i32
    return %c0_i32, %c0_i32_0 : i32, i32
  }
  func.func @transform_4(%arg0: i32) -> (i32, i32) {
    %c0_i32 = arith.constant 0 : i32
    %c0_i32_0 = arith.constant 0 : i32
    %c0_i32_1 = arith.constant 0 : i32
    return %c0_i32, %c0_i32_0 : i32, i32
  }
  func.func @transform_5(%arg0: i32) -> (i32, i32) {
    %c0_i32 = arith.constant 0 : i32
    %c0_i32_0 = arith.constant 0 : i32
    %c0_i32_1 = arith.constant 0 : i32
    return %c0_i32, %c0_i32_0 : i32, i32
  }
  func.func @transform_6(%arg0: i32) -> i32 {
    %c0_i32 = arith.constant 0 : i32
    %c0_i32_0 = arith.constant 0 : i32
    return %c0_i32 : i32
  }
  func.func @transform_7(%arg0: i32) -> (i32, i32, i32) {
    %c0_i32 = arith.constant 0 : i32
    %c0_i32_0 = arith.constant 0 : i32
    %c0_i32_1 = arith.constant 0 : i32
    return %arg0, %c0_i32, %c0_i32_0 : i32, i32, i32
  }
}

</mosaic_0001>

<bundles_post_ra>
// kernel: tpu_custom_call.1
= control target key start
LH: loop header
LB: loop body
LE: loop exit
PB: predicated region body
PF: predicated region fallthrough
CT: control target
= control target key end

     0   :  { %s1836_s0 = inlined_call_operand.vmem [shape: f32[512,64], index: 0, kind: input, shape index: {}]   ;;  %s1837_s1 = inlined_call_operand.vmem [shape: bf16[64,128], index: 1, kind: input, shape index: {}]   ;;  %s1838_s2 = inlined_call_operand.vmem [shape: f32[1,128], index: 2, kind: input, shape index: {}]   ;;  %s1839_s3 = inlined_call_operand.vmem [shape: bf16[128,64], index: 3, kind: input, shape index: {}]   ;;  %s1840_s4 = inlined_call_operand.vmem [shape: f32[1,64], index: 4, kind: input, shape index: {}]   ;;  %s1841_s5 = inlined_call_operand.vmem [shape: bf16[1,64], index: 5, kind: input, shape index: {}]   ;;  %s1842_s6 = inlined_call_operand.<no memory space> [shape: f32[1], index: 6, kind: input, shape index: {}]   ;;  %s1843_s7 = inlined_call_operand.hbm [shape: f32[2,1,256], index: 7, kind: output, shape index: {}]  }
   0x1   :  { %12 = sst [smem:[#allocation2]] %s1842_s6 }
   0x2   :  { %13 = vsyncpa [#allocation4], 0 }
   0x3   :  { %15 = vsyncpa [#allocation4 + $0x1], 0  ;;  %s1523_s26 = smov 0   ;;  %s1525_s27 = smov 0  }
   0x4   :  { %s1527_s28 = smov 0   ;;  %s1529_s29 = smov 0  }
   0x5 LB: > { %s1161_s6 = sadd.s32 4294967295, %s1476_s29   ;;  %s1162_s30 = sadd.s32 4294967294, %s1476_s29   ;;  %s1476_s29 = sphi %s1529_s29, %s1849_s29   ;;  %s1472_s28 = sphi %s1527_s28, %s1848_s28   ;;  %s1468_s27 = sphi %s1525_s27, %s1847_s27   ;;  %s1464_s26 = sphi %s1523_s26, %s1846_s26  }
   0x6   : > { %s1546_s8 = sadd.s32 1, %s1476_s29   ;;  %s180_s9 = sadd.s32 1, %s1472_s28 }
   0x7   : > { %s177_s10 = ssub.s32 %s1476_s29, %s1546_s8  ;;  %p190_p0 = scmp.ne.s32.totalorder %s1472_s28, %s1468_s27 }
   0x8   : > { %p178_p1 = scmp.eq.s32.totalorder %s177_s10, 0  ;;  %p191_p2 = scmp.eq.s32.totalorder %s1161_s6, 1 }
   0x9   : > { %p196_p3 = scmp.ne.s32.totalorder %s1468_s27, %s1464_s26  ;;  %p197_p4 = scmp.eq.s32.totalorder %s1162_s30, 1 }
   0xa   : > { %s1556_s11 = scalar_select %p178_p1, %s1472_s28, %s180_s9  }
   0xb   : > { %p1558_p5 = por %p191_p2, %p190_p0  ;;  %p1562_p6 = por %p197_p4, %p196_p3 }
   0xc   : > { %p1165_p7 = scmp.ge.s32.totalorder %s1476_s29, 1  ;;  %p242_p8 = scmp.lt.s32.totalorder %s1476_s29, 3 }
   0xe   : > { %p243_p9 = pnand %p1165_p7, %p242_p8 }
   0xf   : > { %s1571_s16 = sshll.u32 (!%p243_p9), %s1161_s6, 5  ;;  %s971_s20 = sld [smem:[#allocation2]] (!%p243_p9) }
  0x10   : > { %246 = sbr.rel (%p243_p9) target bundleno = 787 (0x313), region = 48  ;;  %p275_p10 = scmp.lt.s32.totalorder (!%p243_p9), %s1571_s16, 63 }
  0x11   : > { %s1101_s30 = scalar_lea.hbm (!%p243_p9), %s1843_s7, %s1571_s16  ;;  %s1479_s14 = smov (!%p243_p9), [#allocation3]  }
  0x12   : > { %s1420_s15 = sshll.u32 (!%p243_p9), %s1479_s14, 4  ;;  %s1421_s15 = int_to_ptr.vmem [resolvable:$false] %s1420_s15 }
  0x13   : > { %s1422_s17 = scalar_lea.vmem (!%p243_p9), %s1421_s15, 64 }
  0x15   : > { %v1404_v0 = vld [vmem:[%s1837_s1 + $0x18] sm:$0xff]   ;;  %v1405_v1 = vld [vmem:[%s1837_s1 + $0x10] sm:$0xff]   ;;  %v1406_v2 = vld [vmem:[%s1837_s1 + $0x8] sm:$0xff]   ;;  %s276_s21 = scalar_select %p275_p10, %s1571_s16, 63  ;;  %vm368_vm0 = vcmask 523264  }
  0x16   : > { %1268 = vmatprep.subr.bf16.mxu0 %v1404_v0  ;;  %v1408_v3 = vld [vmem:[%s1839_s3 + $0x38] sm:$0xff]   ;;  %v1409_v4 = vld [vmem:[%s1839_s3 + $0x30] sm:$0xff]   ;;  %v1407_v7 = vld [vmem:[%s1837_s1] sm:$0xff]  }
  0x17   : > { %1269 = vmatpush3.bf16.msra.mxu0 %v1404_v0  ;;  %s1168_s24 = sshll.u32 %s276_s21, 3  ;;  %1308 = vmatprep.subr.bf16.mxu1 %v1408_v3  ;;  %v1410_v9 = vld [vmem:[%s1839_s3 + $0x28] sm:$0xff]   ;;  %v1411_v20 = vld [vmem:[%s1839_s3 + $0x20] sm:$0xff]   ;;  %v1412_v56 = vld [vmem:[%s1839_s3 + $0x18] sm:$0xff]   ;;  %s271_s21 = sand.u32 1, %s1468_s27  }
  0x18   : > { %1270 = vmatprep.subr.bf16.mxu0 %v1405_v1  ;;  %s1590_s10 = scalar_lea.vmem %s1836_s0, %s1168_s24  ;;  %1309 = vmatpush3.bf16.msra.mxu1 %v1408_v3  ;;  %v1413_v57 = vld [vmem:[%s1839_s3 + $0x10] sm:$0xff]   ;;  %v1414_v58 = vld [vmem:[%s1839_s3 + $0x8] sm:$0xff]   ;;  %v1415_v59 = vld [vmem:[%s1839_s3] sm:$0xff]   ;;  %s1166_s22 = sshll.u32 %s271_s21, 1 }
  0x19   : > { %v281_v5 = vld [vmem:[%s1590_s10] sm:$0xff]  ;;  %v282_v6 = vld [vmem:[%s1590_s10 + $0x8] sm:$0xff]  ;;  %1310 = vmatprep.subr.bf16.mxu1 %v1409_v4  ;;  %v283_v10 = vld [vmem:[%s1590_s10 + $0x10] sm:$0xff]  ;;  %s273_s23 = scalar_lea.vmem [#allocation3], %s1166_s22  ;;  %s1089_s9 = scalar_lea.sflag [#allocation4], %s271_s21 }
  0x1a   : > { %v313_v8 = vpack.c.bf16 %v282_v6, %v281_v5  ;;  %v284_v11 = vld [vmem:[%s1590_s10 + $0x18] sm:$0xff]  ;;  %v285_v12 = vld [vmem:[%s1590_s10 + $0x20] sm:$0xff]  ;;  %v286_v13 = vld [vmem:[%s1590_s10 + $0x28] sm:$0xff]  ;;  %s1103_s24 = sshll.u32 %s273_s23, 4  ;;  %s1104_s24 = int_to_ptr.vmem [resolvable:$true] %s1103_s24 }
  0x1b   : > { %1271 = vmatpush3.bf16.msra.mxu0 %v1405_v1  ;;  %v314_v14 = vpack.c.bf16 %v284_v11, %v283_v10  ;;  %v315_v15 = vpack.c.bf16 %v286_v13, %v285_v12  ;;  %v287_v16 = vld [vmem:[%s1590_s10 + $0x30] sm:$0xff]  ;;  %v288_v17 = vld [vmem:[%s1590_s10 + $0x38] sm:$0xff]  ;;  %v289_v18 = vld [vmem:[%s1590_s10 + $0x40] sm:$0xff]  ;;  %p1423_p0 = scmp.lt.s32.totalorder %s1104_s24, %s1421_s15 }
  0x1c   : > { %1272 = vmatprep.subr.bf16.mxu0 %v1406_v2  ;;  %1276 = vmatprep.mubr.msk.bf16.mxu0 %vm368_vm0, %v313_v8  ;;  %v290_v19 = vld [vmem:[%s1590_s10 + $0x48] sm:$0xff]  ;;  %v316_v21 = vpack.c.bf16 %v288_v17, %v287_v16  ;;  %v291_v23 = vld [vmem:[%s1590_s10 + $0x50] sm:$0xff]  ;;  %v292_v24 = vld [vmem:[%s1590_s10 + $0x58] sm:$0xff] }
  0x1d   : > { %1311 = vmatpush3.bf16.msra.mxu1 %v1409_v4  ;;  %v317_v22 = vpack.c.bf16 %v290_v19, %v289_v18  ;;  %v293_v25 = vld [vmem:[%s1590_s10 + $0x60] sm:$0xff]  ;;  %v294_v26 = vld [vmem:[%s1590_s10 + $0x68] sm:$0xff]  ;;  %v318_v27 = vpack.c.bf16 %v292_v24, %v291_v23  ;;  %v295_v29 = vld [vmem:[%s1590_s10 + $0x70] sm:$0xff] }
  0x1e   : > { %1312 = vmatprep.subr.bf16.mxu1 %v1410_v9  ;;  %v319_v28 = vpack.c.bf16 %v294_v26, %v293_v25  ;;  %v296_v30 = vld [vmem:[%s1590_s10 + $0x78] sm:$0xff]  ;;  %v297_v31 = vld [vmem:[%s1590_s10 + $0x80] sm:$0xff]  ;;  %v298_v32 = vld [vmem:[%s1590_s10 + $0x88] sm:$0xff] }
  0x1f   : > { %1273 = vmatpush3.bf16.msra.mxu0 %v1406_v2  ;;  %v320_v33 = vpack.c.bf16 %v296_v30, %v295_v29  ;;  %v321_v34 = vpack.c.bf16 %v298_v32, %v297_v31  ;;  %v299_v35 = vld [vmem:[%s1590_s10 + $0x90] sm:$0xff]  ;;  %v300_v36 = vld [vmem:[%s1590_s10 + $0x98] sm:$0xff]  ;;  %v301_v37 = vld [vmem:[%s1590_s10 + $0xa0] sm:$0xff] }
  0x20   : > { %1274 = vmatprep.subr.bf16.mxu0 %v1407_v7  ;;  %v302_v38 = vld [vmem:[%s1590_s10 + $0xa8] sm:$0xff]  ;;  %v322_v39 = vpack.c.bf16 %v300_v36, %v299_v35  ;;  %v303_v41 = vld [vmem:[%s1590_s10 + $0xb0] sm:$0xff]  ;;  %v304_v42 = vld [vmem:[%s1590_s10 + $0xb8] sm:$0xff] }
  0x21   : > { %1313 = vmatpush3.bf16.msra.mxu1 %v1410_v9  ;;  %v323_v40 = vpack.c.bf16 %v302_v38, %v301_v37  ;;  %v305_v43 = vld [vmem:[%s1590_s10 + $0xc0] sm:$0xff]  ;;  %v306_v44 = vld [vmem:[%s1590_s10 + $0xc8] sm:$0xff]  ;;  %v324_v45 = vpack.c.bf16 %v304_v42, %v303_v41  ;;  %v307_v47 = vld [vmem:[%s1590_s10 + $0xd0] sm:$0xff] }
  0x22   : > { %1314 = vmatprep.subr.bf16.mxu1 %v1411_v20  ;;  %v325_v46 = vpack.c.bf16 %v306_v44, %v305_v43  ;;  %v308_v48 = vld [vmem:[%s1590_s10 + $0xd8] sm:$0xff]  ;;  %v309_v49 = vld [vmem:[%s1590_s10 + $0xe0] sm:$0xff]  ;;  %v310_v50 = vld [vmem:[%s1590_s10 + $0xe8] sm:$0xff] }
  0x23   : > { %1275 = vmatpush3.bf16.msra.mxu0 %v1407_v7  ;;  %v326_v51 = vpack.c.bf16 %v308_v48, %v307_v47  ;;  %v327_v52 = vpack.c.bf16 %v310_v50, %v309_v49  ;;  %v311_v53 = vld [vmem:[%s1590_s10 + $0xf0] sm:$0xff]  ;;  %v312_v54 = vld [vmem:[%s1590_s10 + $0xf8] sm:$0xff]  ;;  %v1664_v61 = vld [vmem:[%s1838_s2] ss:$0 sm:$0xff]  ;;  %s1416_s10 = scalar_lea.vmem %s1104_s24, 32 }
  0x24   : > { %v328_v55 = vpack.c.bf16 %v312_v54, %v311_v53  ;;  %p1417_p11 = scmp.ne.s32.totalorder %s1104_s24, %s1416_s10  ;;  %p1424_p1 = scmp.lt.s32.totalorder %s1422_s17, %s1416_s10 }
  0x25   : > { %1315 = vmatpush3.bf16.msra.mxu1 %v1411_v20 }
  0x26   : > { %1277 = vmatmul.mubr.msk.bf16.vlgmr.msra.gmra.mxu0 %vm368_vm0, %v314_v14  ;;  %1316 = vmatprep.subr.bf16.mxu1 %v1412_v56  ;;  %p1418_p12 = pnand %p1417_p11, %p1558_p5  ;;  %p1425_p2 = por %p1424_p1, %p1423_p0 }
  0x27   : > { %1280 = vmatprep.mubr.msk.bf16.mxu0 %vm368_vm0, %v315_v15 }
  0x28   : > { %p1419_p13 = pneg %p1418_p12 }
  0x29   : > { %1317 = vmatpush3.bf16.msra.mxu1 %v1412_v56 }
  0x2a   : > { %1318 = vmatprep.subr.bf16.mxu1 %v1413_v57  ;;  %p1426_p3 = pnand %p1425_p2, %p1419_p13 }
  0x2d   : > { %1319 = vmatpush3.bf16.msra.mxu1 %v1413_v57 }
  0x2e   : > { %1281 = vmatmul.mubr.msk.bf16.gmra.mxu0 %vm368_vm0, %v316_v21  ;;  %1320 = vmatprep.subr.bf16.mxu1 %v1414_v58 }
  0x2f   : > { %1284 = vmatprep.mubr.msk.bf16.mxu0 %vm368_vm0, %v317_v22 }
  0x31   : > { %1321 = vmatpush3.bf16.msra.mxu1 %v1414_v58 }
  0x32   : > { %1322 = vmatprep.subr.bf16.mxu1 %v1415_v59 }
  0x35   : > { %1323 = vmatpush3.bf16.msra.mxu1 %v1415_v59 }
  0x36   : > { %1285 = vmatmul.mubr.msk.bf16.gmra.mxu0 %vm368_vm0, %v318_v27 }
  0x37   : > { %1288 = vmatprep.mubr.msk.bf16.mxu0 %vm368_vm0, %v319_v28 }
  0x3e   : > { %1289 = vmatmul.mubr.msk.bf16.gmra.mxu0 %vm368_vm0, %v320_v33 }
  0x3f   : > { %1292 = vmatprep.mubr.msk.bf16.mxu0 %vm368_vm0, %v321_v34 }
  0x46   : > { %1293 = vmatmul.mubr.msk.bf16.gmra.mxu0 %vm368_vm0, %v322_v39 }
  0x47   : > { %1296 = vmatprep.mubr.msk.bf16.mxu0 %vm368_vm0, %v323_v40 }
  0x4e   : > { %1297 = vmatmul.mubr.msk.bf16.gmra.mxu0 %vm368_vm0, %v324_v45 }
  0x4f   : > { %1300 = vmatprep.mubr.msk.bf16.mxu0 %vm368_vm0, %v325_v46 }
  0x56   : > { %1301 = vmatmul.mubr.msk.bf16.gmra.mxu0 %vm368_vm0, %v326_v51 }
  0x57   : > { %1304 = vmatprep.mubr.msk.bf16.mxu0 %vm368_vm0, %v327_v52 }
  0x5e   : > { %1305 = vmatmul.mubr.msk.bf16.gmra.mxu0 %vm368_vm0, %v328_v55 }
  0xe6   : > { %v1278_v60 = vpop.f32.mrf.mxu0 }
  0xe7   : > { %v460_v0 = vadd.f32 %v1278_v60, %v1664_v61 }
  0xe8   : > { %v451_v62 = vpop.f32.mrf.mxu0 }
  0xe9   : > { %v452_v63 = vadd.f32 %v1664_v61, %v451_v62  ;;  %v580_v7 = vmul.f32 0.2, %v460_v0 }
  0xea   : > { %v1279_v1 = vpop.f32.mrf.mxu0 }
  0xeb   : > { %v463_v2 = vadd.f32 %v1279_v1, %v1664_v61  ;;  %v578_v4 = vmul.f32 0.2, %v452_v63  ;;  %v612_v15 = vmax.f32 %v460_v0, %v580_v7 }
  0xec   : > { %v454_v3 = vpop.f32.mrf.mxu0 }
  0xed   : > { %v581_v5 = vmul.f32 0.2, %v463_v2  ;;  %v455_v6 = vadd.f32 %v1664_v61, %v454_v3  ;;  %v610_v13 = vmax.f32 %v452_v63, %v578_v4 }
  0xee   : > { %v1282_v8 = vpop.f32.mrf.mxu0 }
  0xef   : > { %v579_v9 = vmul.f32 0.2, %v455_v6  ;;  %v613_v10 = vmax.f32 %v463_v2, %v581_v5  ;;  %v476_v16 = vadd.f32 %v1282_v8, %v1664_v61 }
  0xf0   : > { %v467_v11 = vpop.f32.mrf.mxu0 }
  0xf1   : > { %v468_v12 = vadd.f32 %v1664_v61, %v467_v11  ;;  %v611_v14 = vmax.f32 %v455_v6, %v579_v9  ;;  %v643_v21 = vpack.c.bf16 %v613_v10, %v612_v15  ;;  %v584_v25 = vmul.f32 0.2, %v476_v16 }
  0xf2   : > { %v1283_v17 = vpop.f32.mrf.mxu0 }
  0xf3   : > { %v479_v18 = vadd.f32 %v1283_v17, %v1664_v61  ;;  %v642_v19 = vpack.c.bf16 %v611_v14, %v610_v13  ;;  %v582_v22 = vmul.f32 0.2, %v468_v12  ;;  %v616_v33 = vmax.f32 %v476_v16, %v584_v25 }
  0xf4   : > { %v470_v20 = vpop.f32.mrf.mxu0 }
  0xf5   : > { %v585_v23 = vmul.f32 0.2, %v479_v18  ;;  %v471_v24 = vadd.f32 %v1664_v61, %v470_v20  ;;  %1324 = vmatprep.mubr.bf16.mxu1 %v642_v19  ;;  %v614_v30 = vmax.f32 %v468_v12, %v582_v22 }
  0xf6   : > { %v1286_v26 = vpop.f32.mrf.mxu0  ;;  %1325 = vmatmul.mubr.bf16.vlgmr.msra.gmra.mxu1 %v643_v21 }
  0xf7   : > { %v583_v27 = vmul.f32 0.2, %v471_v24  ;;  %v617_v28 = vmax.f32 %v479_v18, %v585_v23  ;;  %v492_v34 = vadd.f32 %v1286_v26, %v1664_v61 }
  0xf8   : > { %v483_v29 = vpop.f32.mrf.mxu0 }
  0xf9   : > { %v615_v31 = vmax.f32 %v471_v24, %v583_v27  ;;  %v484_v32 = vadd.f32 %v1664_v61, %v483_v29  ;;  %v645_v39 = vpack.c.bf16 %v617_v28, %v616_v33  ;;  %v588_v43 = vmul.f32 0.2, %v492_v34 }
  0xfa   : > { %v1287_v35 = vpop.f32.mrf.mxu0 }
  0xfb   : > { %v495_v36 = vadd.f32 %v1287_v35, %v1664_v61  ;;  %v644_v37 = vpack.c.bf16 %v615_v31, %v614_v30  ;;  %v586_v40 = vmul.f32 0.2, %v484_v32  ;;  %v620_v51 = vmax.f32 %v492_v34, %v588_v43 }
  0xfc   : > { %v486_v38 = vpop.f32.mrf.mxu0 }
  0xfd   : > { %v589_v41 = vmul.f32 0.2, %v495_v36  ;;  %v487_v42 = vadd.f32 %v1664_v61, %v486_v38  ;;  %1328 = vmatprep.mubr.bf16.mxu1 %v644_v37  ;;  %v618_v48 = vmax.f32 %v484_v32, %v586_v40 }
  0xfe   : > { %v1290_v44 = vpop.f32.mrf.mxu0  ;;  %1329 = vmatmul.mubr.bf16.gmra.mxu1 %v645_v39 }
  0xff   : > { %v587_v45 = vmul.f32 0.2, %v487_v42  ;;  %v621_v46 = vmax.f32 %v495_v36, %v589_v41  ;;  %v508_v52 = vadd.f32 %v1290_v44, %v1664_v61 }
 0x100   : > { %v499_v47 = vpop.f32.mrf.mxu0 }
 0x101   : > { %v619_v49 = vmax.f32 %v487_v42, %v587_v45  ;;  %v500_v50 = vadd.f32 %v1664_v61, %v499_v47  ;;  %v647_v57 = vpack.c.bf16 %v621_v46, %v620_v51  ;;  %v592_v62 = vmul.f32 0.2, %v508_v52 }
 0x102   : > { %v1291_v53 = vpop.f32.mrf.mxu0 }
 0x103   : > { %v511_v54 = vadd.f32 %v1291_v53, %v1664_v61  ;;  %v646_v55 = vpack.c.bf16 %v619_v49, %v618_v48  ;;  %v590_v58 = vmul.f32 0.2, %v500_v50  ;;  %v624_v6 = vmax.f32 %v508_v52, %v592_v62 }
 0x104   : > { %v502_v56 = vpop.f32.mrf.mxu0 }
 0x105   : > { %v593_v59 = vmul.f32 0.2, %v511_v54  ;;  %v503_v60 = vadd.f32 %v1664_v61, %v502_v56  ;;  %1332 = vmatprep.mubr.bf16.mxu1 %v646_v55  ;;  %v622_v3 = vmax.f32 %v500_v50, %v590_v58 }
 0x106   : > { %v1294_v63 = vpop.f32.mrf.mxu0  ;;  %1333 = vmatmul.mubr.bf16.gmra.mxu1 %v647_v57 }
 0x107   : > { %v591_v0 = vmul.f32 0.2, %v503_v60  ;;  %v625_v1 = vmax.f32 %v511_v54, %v593_v59  ;;  %v524_v7 = vadd.f32 %v1294_v63, %v1664_v61 }
 0x108   : > { %v515_v2 = vpop.f32.mrf.mxu0 }
 0x109   : > { %v623_v4 = vmax.f32 %v503_v60, %v591_v0  ;;  %v516_v5 = vadd.f32 %v1664_v61, %v515_v2  ;;  %v649_v12 = vpack.c.bf16 %v625_v1, %v624_v6  ;;  %v596_v16 = vmul.f32 0.2, %v524_v7 }
 0x10a   : > { %v1295_v8 = vpop.f32.mrf.mxu0 }
 0x10b   : > { %v527_v9 = vadd.f32 %v1295_v8, %v1664_v61  ;;  %v648_v10 = vpack.c.bf16 %v623_v4, %v622_v3  ;;  %v594_v13 = vmul.f32 0.2, %v516_v5  ;;  %v628_v24 = vmax.f32 %v524_v7, %v596_v16 }
 0x10c   : > { %v518_v11 = vpop.f32.mrf.mxu0 }
 0x10d   : > { %v597_v14 = vmul.f32 0.2, %v527_v9  ;;  %v519_v15 = vadd.f32 %v1664_v61, %v518_v11  ;;  %1336 = vmatprep.mubr.bf16.mxu1 %v648_v10  ;;  %v626_v21 = vmax.f32 %v516_v5, %v594_v13 }
 0x10e   : > { %v1298_v17 = vpop.f32.mrf.mxu0  ;;  %1337 = vmatmul.mubr.bf16.gmra.mxu1 %v649_v12 }
 0x10f   : > { %v595_v18 = vmul.f32 0.2, %v519_v15  ;;  %v629_v19 = vmax.f32 %v527_v9, %v597_v14  ;;  %v540_v25 = vadd.f32 %v1298_v17, %v1664_v61 }
 0x110   : > { %v531_v20 = vpop.f32.mrf.mxu0 }
 0x111   : > { %v627_v22 = vmax.f32 %v519_v15, %v595_v18  ;;  %v532_v23 = vadd.f32 %v1664_v61, %v531_v20  ;;  %v651_v30 = vpack.c.bf16 %v629_v19, %v628_v24  ;;  %v600_v34 = vmul.f32 0.2, %v540_v25  ;;  %v1701_v15 = vld [vmem:[%s1840_s4] ss:$0 sm:$0xff] }
 0x112   : > { %v1299_v26 = vpop.f32.mrf.mxu0 }
 0x113   : > { %v543_v27 = vadd.f32 %v1299_v26, %v1664_v61  ;;  %v650_v28 = vpack.c.bf16 %v627_v22, %v626_v21  ;;  %v598_v31 = vmul.f32 0.2, %v532_v23  ;;  %v632_v42 = vmax.f32 %v540_v25, %v600_v34 }
 0x114   : > { %v534_v29 = vpop.f32.mrf.mxu0 }
 0x115   : > { %v601_v32 = vmul.f32 0.2, %v543_v27  ;;  %v535_v33 = vadd.f32 %v1664_v61, %v534_v29  ;;  %1340 = vmatprep.mubr.bf16.mxu1 %v650_v28  ;;  %v630_v39 = vmax.f32 %v532_v23, %v598_v31 }
 0x116   : > { %v1302_v35 = vpop.f32.mrf.mxu0  ;;  %1341 = vmatmul.mubr.bf16.gmra.mxu1 %v651_v30 }
 0x117   : > { %v599_v36 = vmul.f32 0.2, %v535_v33  ;;  %v633_v37 = vmax.f32 %v543_v27, %v601_v32  ;;  %v556_v43 = vadd.f32 %v1302_v35, %v1664_v61 }
 0x118   : > { %v547_v38 = vpop.f32.mrf.mxu0 }
 0x119   : > { %v631_v40 = vmax.f32 %v535_v33, %v599_v36  ;;  %v548_v41 = vadd.f32 %v1664_v61, %v547_v38  ;;  %v653_v48 = vpack.c.bf16 %v633_v37, %v632_v42  ;;  %v604_v52 = vmul.f32 0.2, %v556_v43 }
 0x11a   : > { %v1303_v44 = vpop.f32.mrf.mxu0 }
 0x11b   : > { %v559_v45 = vadd.f32 %v1303_v44, %v1664_v61  ;;  %v652_v46 = vpack.c.bf16 %v631_v40, %v630_v39  ;;  %v602_v49 = vmul.f32 0.2, %v548_v41  ;;  %v636_v60 = vmax.f32 %v556_v43, %v604_v52 }
 0x11c   : > { %v550_v47 = vpop.f32.mrf.mxu0 }
 0x11d   : > { %v605_v50 = vmul.f32 0.2, %v559_v45  ;;  %v551_v51 = vadd.f32 %v1664_v61, %v550_v47  ;;  %1344 = vmatprep.mubr.bf16.mxu1 %v652_v46  ;;  %v634_v57 = vmax.f32 %v548_v41, %v602_v49 }
 0x11e   : > { %v1306_v53 = vpop.f32.mrf.mxu0  ;;  %1345 = vmatmul.mubr.bf16.gmra.mxu1 %v653_v48 }
 0x11f   : > { %v603_v54 = vmul.f32 0.2, %v551_v51  ;;  %v637_v55 = vmax.f32 %v559_v45, %v605_v50  ;;  %v572_v62 = vadd.f32 %v1306_v53, %v1664_v61 }
 0x120   : > { %v563_v56 = vpop.f32.mrf.mxu0 }
 0x121   : > { %v635_v58 = vmax.f32 %v551_v51, %v603_v54  ;;  %v564_v59 = vadd.f32 %v1664_v61, %v563_v56  ;;  %v655_v3 = vpack.c.bf16 %v637_v55, %v636_v60  ;;  %v608_v7 = vmul.f32 0.2, %v572_v62 }
 0x122   : > { %v1307_v63 = vpop.f32.mrf.mxu0 }
 0x123   : > { %v575_v0 = vadd.f32 %v1307_v63, %v1664_v61  ;;  %v654_v1 = vpack.c.bf16 %v635_v58, %v634_v57  ;;  %v606_v4 = vmul.f32 0.2, %v564_v59  ;;  %v640_v12 = vmax.f32 %v572_v62, %v608_v7 }
 0x124   : > { %v566_v2 = vpop.f32.mrf.mxu0 }
 0x125   : > { %v609_v5 = vmul.f32 0.2, %v575_v0  ;;  %v567_v6 = vadd.f32 %v1664_v61, %v566_v2  ;;  %1348 = vmatprep.mubr.bf16.mxu1 %v654_v1  ;;  %v638_v10 = vmax.f32 %v564_v59, %v606_v4  ;;  %v1706_v61 = vld [vmem:[%s1841_s5] sm:$0x1] }
 0x126   : > { %1349 = vmatmul.mubr.bf16.gmra.mxu1 %v655_v3  ;;  %1266 = vmatprep.mubr.msk.bf16.mxu0 %vm368_vm0, %v1706_v61 }
 0x127   : > { %v607_v8 = vmul.f32 0.2, %v567_v6  ;;  %v641_v9 = vmax.f32 %v575_v0, %v609_v5 }
 0x129   : > { %v639_v11 = vmax.f32 %v567_v6, %v607_v8  ;;  %v657_v14 = vpack.c.bf16 %v641_v9, %v640_v12 }
 0x12b   : > { %v656_v13 = vpack.c.bf16 %v639_v11, %v638_v10 }
 0x12d   : > { %1352 = vmatprep.mubr.bf16.mxu1 %v656_v13 }
 0x12e   : > { %1353 = vmatmul.mubr.bf16.gmra.mxu1 %v657_v14 }
 0x1b6   : > { %v1326_v16 = vpop.f32.mrf.mxu1 }
 0x1b7   : > { %v772_v17 = vadd.f32 %v1326_v16, %v1701_v15 }
 0x1b8   : > { %v763_v18 = vpop.f32.mrf.mxu1 }
 0x1b9   : > { %v764_v19 = vadd.f32 %v1701_v15, %v763_v18  ;;  %v892_v21 = vmul.f32 0.2, %v772_v17 }
 0x1ba   : > { %v1327_v20 = vpop.f32.mrf.mxu1 }
 0x1bb   : > { %v775_v22 = vadd.f32 %v1327_v20, %v1701_v15  ;;  %v890_v24 = vmul.f32 0.2, %v764_v19  ;;  %v924_v28 = vmax.f32 %v772_v17, %v892_v21 }
 0x1bc   : > { %v766_v23 = vpop.f32.mrf.mxu1 }
 0x1bd   : > { %v893_v25 = vmul.f32 0.2, %v775_v22  ;;  %v767_v26 = vadd.f32 %v1701_v15, %v766_v23  ;;  %v922_v33 = vmax.f32 %v764_v19, %v890_v24 }
 0x1be   : > { %v1330_v27 = vpop.f32.mrf.mxu1 }
 0x1bf   : > { %v925_v29 = vmax.f32 %v775_v22, %v893_v25  ;;  %v891_v30 = vmul.f32 0.2, %v767_v26  ;;  %v788_v31 = vadd.f32 %v1330_v27, %v1701_v15 }
 0x1c0   : > { %v779_v32 = vpop.f32.mrf.mxu1 }
 0x1c1   : > { %v1715_v34 = vpack.c.bf16 %v925_v29, %v924_v28  ;;  %v923_v35 = vmax.f32 %v767_v26, %v891_v30  ;;  %v780_v36 = vadd.f32 %v1701_v15, %v779_v32  ;;  %v896_v39 = vmul.f32 0.2, %v788_v31 }
 0x1c2   : > { %v1331_v37 = vpop.f32.mrf.mxu1 }
 0x1c3   : > { %v1718_v38 = vpack.c.bf16 %v923_v35, %v922_v33  ;;  %v791_v40 = vadd.f32 %v1331_v37, %v1701_v15  ;;  %v894_v42 = vmul.f32 0.2, %v780_v36  ;;  %v928_v46 = vmax.f32 %v788_v31, %v896_v39 }
 0x1c4   : > { %v782_v41 = vpop.f32.mrf.mxu1 }
 0x1c5   : > { %v897_v43 = vmul.f32 0.2, %v791_v40  ;;  %v783_v44 = vadd.f32 %v1701_v15, %v782_v41  ;;  %v926_v50 = vmax.f32 %v780_v36, %v894_v42 }
 0x1c6   : > { %v1722_v45 = vpop.f32.mrf.mxu1 }
 0x1c7   : > { %v929_v47 = vmax.f32 %v791_v40, %v897_v43  ;;  %v895_v48 = vmul.f32 0.2, %v783_v44 }
 0x1c8   : > { %v1724_v49 = vpop.f32.mrf.mxu1 }
 0x1c9   : > { %v1726_v51 = vpack.c.bf16 %v929_v47, %v928_v46  ;;  %v927_v52 = vmax.f32 %v783_v44, %v895_v48 }
 0x1ca   : > { %v1728_v53 = vpop.f32.mrf.mxu1 }
 0x1cb   : > { %v1730_v54 = vpack.c.bf16 %v927_v52, %v926_v50 }
 0x1cc   : > { %v1732_v55 = vpop.f32.mrf.mxu1 }
 0x1ce   : > { %v1338_v56 = vpop.f32.mrf.mxu1 }
 0x1cf   : > { %v820_v24 = vadd.f32 %v1338_v56, %v1701_v15 }
 0x1d0   : > { %v811_v57 = vpop.f32.mrf.mxu1 }
 0x1d1   : > { %v904_v29 = vmul.f32 0.2, %v820_v24  ;;  %v812_v40 = vadd.f32 %v1701_v15, %v811_v57  ;;  %v807_v57 = vadd.f32 %v1728_v53, %v1701_v15 }
 0x1d2   : > { %v1339_v58 = vpop.f32.mrf.mxu1 }
 0x1d3   : > { %v823_v22 = vadd.f32 %v1339_v58, %v1701_v15  ;;  %v936_v39 = vmax.f32 %v820_v24, %v904_v29  ;;  %v902_v58 = vmul.f32 0.2, %v812_v40 }
 0x1d4   : > { %v814_v59 = vpop.f32.mrf.mxu1 }
 0x1d5   : > { %v905_v26 = vmul.f32 0.2, %v823_v22  ;;  %v815_v33 = vadd.f32 %v1701_v15, %v814_v59 }
 0x1d6   : > { %v1342_v60 = vpop.f32.mrf.mxu1 }
 0x1d7   : > { %v836_v62 = vadd.f32 %v1342_v60, %v1701_v15  ;;  %v937_v32 = vmax.f32 %v823_v22, %v905_v26  ;;  %v903_v47 = vmul.f32 0.2, %v815_v33 }
 0x1d8   : > { %v827_v63 = vpop.f32.mrf.mxu1 }
 0x1d9   : > { %v828_v0 = vadd.f32 %v1701_v15, %v827_v63  ;;  %v908_v2 = vmul.f32 0.2, %v836_v62  ;;  %v962_v46 = vpack.c.bf16 %v937_v32, %v936_v39 }
 0x1da   : > { %v1343_v1 = vpop.f32.mrf.mxu1 }
 0x1db   : > { %v839_v3 = vadd.f32 %v1343_v1, %v1701_v15  ;;  %v906_v5 = vmul.f32 0.2, %v828_v0  ;;  %v940_v9 = vmax.f32 %v836_v62, %v908_v2 }
 0x1dc   : > { %v830_v4 = vpop.f32.mrf.mxu1 }
 0x1dd   : > { %v909_v6 = vmul.f32 0.2, %v839_v3  ;;  %v831_v7 = vadd.f32 %v1701_v15, %v830_v4  ;;  %v938_v13 = vmax.f32 %v828_v0, %v906_v5  ;;  %v935_v0 = vmax.f32 %v815_v33, %v903_v47 }
 0x1de   : > { %v1738_v8 = vpop.f32.mrf.mxu1  ;;  %v804_v4 = vadd.f32 %v1722_v45, %v1701_v15  ;;  %v934_v5 = vmax.f32 %v812_v40, %v902_v58  ;;  %v1071_v58 = vlaneseq }
 0x1df   : > { %v941_v10 = vmax.f32 %v839_v3, %v909_v6  ;;  %v907_v11 = vmul.f32 0.2, %v831_v7  ;;  %v998_v3 = vsel %vm368_vm0, %v962_v46, 0 }
 0x1e0   : > { %v1740_v12 = vpop.f32.mrf.mxu1  ;;  %vm1085_vm1 = vcmp.lt.s32.totalorder %v1071_v58, 256 }
 0x1e1   : > { %v1742_v14 = vpack.c.bf16 %v941_v10, %v940_v9  ;;  %v939_v16 = vmax.f32 %v831_v7, %v907_v11  ;;  %v901_v7 = vmul.f32 0.2, %v807_v57  ;;  %v961_v9 = vpack.c.bf16 %v935_v0, %v934_v5 }
 0x1e2   : > { %v1744_v17 = vpop.f32.mrf.mxu1  ;;  %v900_v11 = vmul.f32 0.2, %v804_v4 }
 0x1e3   : > { %v1746_v18 = vpack.c.bf16 %v939_v16, %v938_v13  ;;  %v933_v22 = vmax.f32 %v807_v57, %v901_v7  ;;  %v995_v45 = vsel %vm368_vm0, %v961_v9, 0 }
 0x1e4   : > { %v1748_v19 = vpop.f32.mrf.mxu1  ;;  %v932_v26 = vmax.f32 %v804_v4, %v900_v11 }
 0x1e6   : > { %v1350_v20 = vpop.f32.mrf.mxu1 }
 0x1e7   : > { %v868_v59 = vadd.f32 %v1350_v20, %v1701_v15  ;;  %v799_v20 = vadd.f32 %v1701_v15, %v1732_v55 }
 0x1e8   : > { %v859_v21 = vpop.f32.mrf.mxu1 }
 0x1e9   : > { %v916_v6 = vmul.f32 0.2, %v868_v59  ;;  %v860_v16 = vadd.f32 %v1701_v15, %v859_v21  ;;  %v899_v29 = vmul.f32 0.2, %v799_v20  ;;  %v855_v21 = vadd.f32 %v1744_v17, %v1701_v15 }
 0x1ea   : > { %v1351_v23 = vpop.f32.mrf.mxu1  ;;  %v847_v17 = vadd.f32 %v1701_v15, %v1748_v19 }
 0x1eb   : > { %v871_v48 = vadd.f32 %v1351_v23, %v1701_v15  ;;  %v948_v13 = vmax.f32 %v868_v59, %v916_v6  ;;  %v931_v33 = vmax.f32 %v799_v20, %v899_v29  ;;  %v1072_v59 = vshrl.u32 %v1071_v58, 7 }
 0x1ec   : > { %v862_v25 = vpop.f32.mrf.mxu1 }
 0x1ed   : > { %v917_v1 = vmul.f32 0.2, %v871_v48  ;;  %v863_v53 = vadd.f32 %v1701_v15, %v862_v25  ;;  %v960_v25 = vpack.c.bf16 %v933_v22, %v932_v26 }
 0x1ee   : > { %v1354_v27 = vpop.f32.mrf.mxu1 }
 0x1ef   : > { %v884_v28 = vadd.f32 %v1354_v27, %v1701_v15  ;;  %v949_v10 = vmax.f32 %v871_v48, %v917_v1  ;;  %v915_v24 = vmul.f32 0.2, %v863_v53  ;;  %v796_v27 = vadd.f32 %v1701_v15, %v1724_v49 }
 0x1f0   : > { %v875_v30 = vpop.f32.mrf.mxu1 }
 0x1f1   : > { %v876_v31 = vadd.f32 %v1701_v15, %v875_v30  ;;  %v920_v36 = vmul.f32 0.2, %v884_v28  ;;  %v968_v23 = vpack.c.bf16 %v949_v10, %v948_v13  ;;  %v947_v30 = vmax.f32 %v863_v53, %v915_v24 }
 0x1f2   : > { %v1355_v35 = vpop.f32.mrf.mxu1  ;;  %v898_v55 = vmul.f32 0.2, %v796_v27 }
 0x1f3   : > { %v887_v37 = vadd.f32 %v1355_v35, %v1701_v15  ;;  %v918_v42 = vmul.f32 0.2, %v876_v31  ;;  %v952_v50 = vmax.f32 %v884_v28, %v920_v36  ;;  %v914_v28 = vmul.f32 0.2, %v860_v16 }
 0x1f4   : > { %v878_v41 = vpop.f32.mrf.mxu1  ;;  %v913_v35 = vmul.f32 0.2, %v855_v21  ;;  %v930_v49 = vmax.f32 %v796_v27, %v898_v55 }
 0x1f5   : > { %v921_v43 = vmul.f32 0.2, %v887_v37  ;;  %v879_v44 = vadd.f32 %v1701_v15, %v878_v41  ;;  %v950_v60 = vmax.f32 %v876_v31, %v918_v42  ;;  %v852_v31 = vadd.f32 %v1738_v8, %v1701_v15 }
 0x1f6   : > { %v946_v32 = vmax.f32 %v860_v16, %v914_v28  ;;  %v959_v40 = vpack.c.bf16 %v931_v33, %v930_v49  ;;  %v945_v41 = vmax.f32 %v855_v21, %v913_v35  ;;  %v844_v8 = vadd.f32 %v1701_v15, %v1740_v12 }
 0x1f7   : > { %v953_v52 = vmax.f32 %v887_v37, %v921_v43  ;;  %v919_v56 = vmul.f32 0.2, %v879_v44  ;;  %v992_v37 = vsel %vm368_vm0, %v960_v25, 0  ;;  %v912_v39 = vmul.f32 0.2, %v852_v31 }
 0x1f8   : > { %v967_v36 = vpack.c.bf16 %v947_v30, %v946_v32  ;;  %v989_v46 = vsel %vm368_vm0, %v959_v40, 0  ;;  %v910_v47 = vmul.f32 0.2, %v844_v8  ;;  %v983_v15 = vsel %vm368_vm0, %v1730_v54, 0 }
 0x1f9   : > { %v970_v62 = vpack.c.bf16 %v953_v52, %v952_v50  ;;  %v951_v63 = vmax.f32 %v879_v44, %v919_v56  ;;  %v944_v42 = vmax.f32 %v852_v31, %v912_v39  ;;  %v911_v44 = vmul.f32 0.2, %v847_v17 }
 0x1fa   : > { %v942_v50 = vmax.f32 %v844_v8, %v910_v47  ;;  %v986_v56 = vsel %vm368_vm0, %v1726_v51, 0  ;;  %v980_v12 = vsel %vm368_vm0, %v1715_v34, 0  ;;  %v977_v51 = vsel %vm368_vm0, %v1718_v38, 0 }
 0x1fb   : > { %v969_v2 = vpack.c.bf16 %v951_v63, %v950_v60  ;;  %1356 = vmatprep.subr.msk.bf16.mxu0 %vm368_vm0, %v970_v62  ;;  %v966_v43 = vpack.c.bf16 %v945_v41, %v944_v42  ;;  %v943_v48 = vmax.f32 %v847_v17, %v911_v44  ;;  %v1478_v54 = vmov 1966171168  }
 0x1fc   : > { %1251 = vmatpush3.bf16.xpose.msra.mxu0 %v998_v3  ;;  %v1069_v19 = vunpack.c.l.s4 %v1478_v54  ;;  %v972_v34 = vstv %s971_s20 }
 0x1fd   : > { %1357 = vmatprep.subr.msk.bf16.mxu0 %vm368_vm0, %v969_v2  ;;  %v965_v52 = vpack.c.bf16 %v943_v48, %v942_v50 }
 0x204   : > { %1253 = vmatpush3.bf16.xpose.msra.mxu0 %v995_v45 }
 0x205   : > { %1358 = vmatprep.subr.msk.bf16.mxu0 %vm368_vm0, %v968_v23 }
 0x20c   : > { %1255 = vmatpush3.bf16.xpose.msra.mxu0 %v992_v37 }
 0x20d   : > { %1359 = vmatprep.subr.msk.bf16.mxu0 %vm368_vm0, %v967_v36 }
 0x214   : > { %1257 = vmatpush3.bf16.xpose.msra.mxu0 %v989_v46 }
 0x215   : > { %1360 = vmatprep.subr.msk.bf16.mxu0 %vm368_vm0, %v966_v43 }
 0x21c   : > { %1259 = vmatpush3.bf16.xpose.msra.mxu0 %v986_v56 }
 0x21d   : > { %1361 = vmatprep.subr.msk.bf16.mxu0 %vm368_vm0, %v965_v52 }
 0x224   : > { %1261 = vmatpush3.bf16.xpose.msra.mxu0 %v983_v15 }
 0x225   : > { %1362 = vmatprep.subr.msk.bf16.mxu0 %vm368_vm0, %v1742_v14  ;;  %v1070_v14 = vunpack.c.0.s8 %v1069_v19 }
 0x227   : > { %v1073_v38 = vsub.s32 %v1070_v14, %v1072_v59 }
 0x22c   : > { %1263 = vmatpush3.bf16.xpose.msra.mxu0 %v980_v12 }
 0x22d   : > { %1363 = vmatprep.subr.msk.bf16.mxu0 %vm368_vm0, %v1746_v18 }
 0x234   : > { %1265 = vmatpush3.bf16.xpose.msra.mxu0 %v977_v51 }
 0x23b   : > { %1267 = vmatmul.mubr.msk.bf16.vlgmr.msra.gmra.mxu0 %vm368_vm0, %v1706_v61 }
 0x2fb   : > { %v1058_v60 = vpop.f32.mrf.mxu0 }
 0x2fc   : > { %v1059_v18 = vadd.f32 %v1058_v60, %v972_v34 }
 0x2fd   : > { %v1060_v62 = vpop.f32.mrf.mxu0 }
 0x2fe   : > { %v1061_v63 = vadd.f32 %v1060_v62, %v972_v34 }
 0x2ff   : > { %v1062_v57 = vpop.f32.mrf.mxu0 }
 0x300   : > { %v1067_v0 = vcombine.low %v1059_v18, %v1061_v63 }
 0x301   : > { %v1063_v1 = vpop.f32.mrf.mxu0 }
 0x302   : > { %v1074_v61 = vrot.slane %v1067_v0, %v1073_v38 }
 0x304   : > { %v1081_v2 = vrot.slane %v1074_v61, %v1073_v38 }
 0x306   : > { %1087 = vst.msk [vmem:[%s273_s23] sm:$0x3] %vm1085_vm1, %v1081_v2 }
 0x307   : > { %1429 = shalt.err (!%p1426_p3)
}
 0x308   : > { %s1430_s18 = scalar_lea.hbm %s1101_s30, 32  ;;  %s1434_s20 = scalar_lea.hbm %s1843_s7, 64 }
 0x309   : > { %p1431_p4 = scmp.ne.s32.totalorder %s1101_s30, %s1430_s18  ;;  %p1435_p9 = scmp.lt.s32.totalorder %s1101_s30, %s1843_s7 }
 0x30a   : > { %p1436_p10 = scmp.lt.s32.totalorder %s1434_s20, %s1430_s18 }
 0x30b   : > { %p1432_p7 = pnand %p1431_p4, %p1558_p5 }
 0x30c   : > { %p1437_p11 = por %p1436_p10, %p1435_p9 }
 0x30d   : > { %p1433_p8 = pneg %p1432_p7 }
 0x30f   : > { %p1438_p12 = pnand %p1437_p11, %p1433_p8 }
 0x311   : > { %1441 = shalt.err (!%p1438_p12)
}
 0x312   : > { %1364 = dma.vmem_to_hbm [thread:$0]  (%p1558_p5), %s1104_s24, 32, %s1101_s30, %s1089_s9  }
 0x313 PF: > { %p1370_p13 = scmp.ge.s32.totalorder %s1476_s29, 2  ;;  %s1115_s23 = sand.u32 1, %s1464_s26  }
 0x314   : > { %s1116_s25 = scalar_lea.sflag [#allocation4], %s1115_s23 }
 0x315   : > { %p1367_p0 = pnand %p1370_p13, %p1562_p6 }
 0x317   : > { %p1368_p1 = pneg %p1367_p0 }
 0x319   : > { %1459 = dma.done.wait (%p1368_p1), %s1116_s25, 32  }
 0x31a   : > { %1461 = vsyncadd (%p1368_p1), %s1116_s25, 4294967264  ;;  %p18_p2 = scmp.ge.s32.totalorder %s1546_s8, 4   ;;  %s1846_s26 = smov %s1468_s27 }
 0x31b   : > { %s1847_s27 = smov %s1472_s28  ;;  %s1848_s28 = smov %s1556_s11 }
 0x31c   : > { %s1849_s29 = smov %s1546_s8  ;;  %20 = sbr.rel (!%p18_p2) target bundleno = 5 (0x5), region = 83 }
 0x321   :  { %1121 = vsyncpa [#allocation4], 1 }
 0x322   :  { %1123 = vsyncpa [#allocation4 + $0x1], 1 }

</bundles_post_ra>
